<compile_context>
chip_gen: v7x
topology: tpu7x:2x2x1
jax: 0.10.0
libtpu: 0.0.40
codegen_flags: <defaults>
</compile_context>

<pallas_src>
import jax
import jax.numpy as jnp
from jax.experimental import pallas as pl
from jax.experimental.pallas import tpu as pltpu


def _round_up(v, m):
    return ((v + m - 1) // m) * m


def _pick_tile(dim, pref, align):
    """Tile for `dim`: the full dim if it is small (full-dim blocks are always
    layout-legal), else the largest multiple of `align` <= pref dividing dim,
    else `pref` (caller pads -- fallback only)."""
    if dim <= pref:
        return dim
    t = (pref // align) * align
    while t >= align:
        if dim % t == 0:
            return t
        t -= align
    return pref


# --------------------------------------------------------------------------
# Stage 1 kernel: xa = x @ A^T   ([M, K] x [K, r] -> [M, r], r tiny)
# --------------------------------------------------------------------------
def _xa_kernel(x_ref, a_ref, xa_ref, acc_ref):
    k = pl.program_id(1)

    @pl.when(k == 0)
    def _init():
        acc_ref[...] = jnp.zeros_like(acc_ref)

    acc_ref[...] += jnp.dot(x_ref[...], a_ref[...],
                            preferred_element_type=jnp.float32)

    @pl.when(k == pl.num_programs(1) - 1)
    def _finalize():
        xa_ref[...] = acc_ref[...]


# --------------------------------------------------------------------------
# Stage 2 kernel: out = x @ W^T + b + xa @ B^T   (fused base GEMM + LoRA)
# --------------------------------------------------------------------------
def _lora_matmul_kernel(x_ref, w_ref, b_ref, xa_ref, bT_ref, o_ref, acc_ref):
    # x_ref:  (tm, tk)   input tile
    # w_ref:  (tk, tn)   base weight tile (pre-transposed W^T)
    # b_ref:  (1,  tn)   bias tile
    # xa_ref: (tm, r)    precomputed x @ A^T tile (f32, resident across j, k)
    # bT_ref: (r,  tn)   lora_B pre-transposed (B^T)
    # o_ref:  (tm, tn)   output tile (resident across the K axis)
    # acc_ref:(tm, tn)   f32 accumulator scratch
    k = pl.program_id(2)

    @pl.when(k == 0)
    def _init():
        acc_ref[...] = jnp.zeros_like(acc_ref)

    acc_ref[...] += jnp.dot(x_ref[...], w_ref[...],
                            preferred_element_type=jnp.float32)

    @pl.when(k == pl.num_programs(2) - 1)
    def _finalize():
        out = acc_ref[...] + b_ref[...].astype(jnp.float32)
        xa = xa_ref[...].astype(jnp.float32)      # (tm, r)
        bT = bT_ref[...].astype(jnp.float32)      # (r, tn)
        r = bT.shape[0]
        # LoRA stage 2 as r rank-1 broadcast-FMA updates on the VPU
        # (avoids a padded K=r MXU pass in every output-tile epilogue).
        for ri in range(r):
            out = out + xa[:, ri:ri + 1] * bT[ri:ri + 1, :]
        o_ref[...] = out.astype(o_ref.dtype)


# --------------------------------------------------------------------------
# One-time weight preparation (call at load time, NOT on the per-call path).
# --------------------------------------------------------------------------
def prepare_lora_weights(w_base, b_base, lora_a, lora_b, *,
                         tn=512, tk=512, compute_dtype=None):
    """Transpose weights to MXU-friendly layouts ([K,N], [K,r], [r,N]),
    optionally cast to compute_dtype (e.g. bf16), and pad N/K to the tile
    grid.  Returns a params dict consumed by lora_linear_forward."""
    N, K = w_base.shape
    r = lora_a.shape[0]

    tn = _pick_tile(N, tn, 128)
    tk = _pick_tile(K, tk, 128)
    Np, Kp = _round_up(N, tn), _round_up(K, tk)

    wT = jnp.transpose(w_base)          # [K, N]
    aT = jnp.transpose(lora_a)          # [K, r]
    bT = jnp.transpose(lora_b)          # [r, N]
    b2d = b_base.reshape(1, N)

    if compute_dtype is not None:
        wT = wT.astype(compute_dtype)
        aT = aT.astype(compute_dtype)

    if Kp != K or Np != N:
        wT = jnp.pad(wT, ((0, Kp - K), (0, Np - N)))
    if Kp != K:
        aT = jnp.pad(aT, ((0, Kp - K), (0, 0)))
    if Np != N:
        bT = jnp.pad(bT, ((0, 0), (0, Np - N)))
        b2d = jnp.pad(b2d, ((0, 0), (0, Np - N)))

    return dict(wT=wT, aT=aT, bT=bT, b2d=b2d,
                N=N, K=K, r=r, Np=Np, Kp=Kp, tn=tn, tk=tk,
                compute_dtype=compute_dtype)


# --------------------------------------------------------------------------
# Forward pass.
# --------------------------------------------------------------------------
def lora_linear_forward(x, params, *, tm=512):
    """x: [..., K]; params: output of prepare_lora_weights.  Returns [..., N]."""
    orig_lead = x.shape[:-1]
    K = x.shape[-1]
    M = 1
    for d in orig_lead:
        M *= d
    assert K == params["K"], "input feature dim mismatch"
    N, r = params["N"], params["r"]
    Np, Kp, tn, tk = params["Np"], params["Kp"], params["tn"], params["tk"]
    out_dtype = x.dtype

    x2d = x.reshape(M, K)
    tm = _pick_tile(M, tm, 8)
    Mp = _round_up(M, tm)

    if params["compute_dtype"] is not None:
        x2d = x2d.astype(params["compute_dtype"])
    if (Mp, Kp) != (M, K):
        # TODO(synk): replace fallback pad with a masked ragged-edge tile to
        # avoid the extra HBM round-trip for non-dividing shapes.
        x2d = jnp.pad(x2d, ((0, Mp - M), (0, Kp - K)))

    vmem_limit = 32 * 1024 * 1024  # ample for 512^2 f32 tiles; v7x-safe

    # ---- Stage 1: xa = x @ A^T (tiny [M, r] result, kept in f32) ----------
    xa = pl.pallas_call(
        _xa_kernel,
        out_shape=jax.ShapeDtypeStruct((Mp, r), jnp.float32),
        grid_spec=pltpu.PrefetchScalarGridSpec(
            num_scalar_prefetch=0,
            grid=(Mp // tm, Kp // tk),
            in_specs=[
                pl.BlockSpec((tm, tk), lambda i, k: (i, k)),   # x tile
                pl.BlockSpec((tk, r), lambda i, k: (k, 0)),    # A^T tile
            ],
            out_specs=pl.BlockSpec((tm, r), lambda i, k: (i, 0)),
            scratch_shapes=[pltpu.VMEM((tm, r), jnp.float32)],
        ),
        compiler_params=pltpu.CompilerParams(
            dimension_semantics=("parallel", "arbitrary"),
            vmem_limit_bytes=vmem_limit,
        ),
    )(x2d, params["aT"])

    # ---- Stage 2: fused base GEMM + bias + xa @ B^T ------------------------
    out = pl.pallas_call(
        _lora_matmul_kernel,
        out_shape=jax.ShapeDtypeStruct((Mp, Np), out_dtype),
        grid_spec=pltpu.PrefetchScalarGridSpec(
            num_scalar_prefetch=0,
            grid=(Mp // tm, Np // tn, Kp // tk),
            in_specs=[
                pl.BlockSpec((tm, tk), lambda i, j, k: (i, k)),   # x tile
                pl.BlockSpec((tk, tn), lambda i, j, k: (k, j)),   # W^T tile
                pl.BlockSpec((1, tn), lambda i, j, k: (0, j)),    # bias tile
                pl.BlockSpec((tm, r), lambda i, j, k: (i, 0)),    # xa tile
                pl.BlockSpec((r, tn), lambda i, j, k: (0, j)),    # B^T tile
            ],
            out_specs=pl.BlockSpec((tm, tn), lambda i, j, k: (i, j)),
            scratch_shapes=[pltpu.VMEM((tm, tn), jnp.float32)],
        ),
        compiler_params=pltpu.CompilerParams(
            # M, N shard across TensorCores (megacore); K is the reduction.
            dimension_semantics=("parallel", "parallel", "arbitrary"),
            vmem_limit_bytes=vmem_limit,
        ),
    )(x2d, params["wT"], params["b2d"], xa, params["bT"])

    out = out[:M, :N]
    return out.reshape(*orig_lead, N)


def _reference(x, w_base, b_base, lora_a, lora_b):
    base = jnp.einsum("...k,nk->...n", x, w_base) + b_base
    xa = jnp.einsum("...k,rk->...r", x, lora_a)
    return base + jnp.einsum("...r,nr->...n", xa, lora_b)


if __name__ == "__main__":
    key = jax.random.PRNGKey(0)

    # ---- Test 1: small f32 case matching the module's natural shapes ------
    batch, seq = 2, 8
    in_features, out_features, rank = 32, 32, 4
    kx, kw, kb, ka, kbm = jax.random.split(key, 5)
    x = jax.random.normal(kx, (batch, seq, in_features), jnp.float32)
    w_base = jax.random.normal(kw, (out_features, in_features), jnp.float32) * 0.1
    b_base = jax.random.normal(kb, (out_features,), jnp.float32) * 0.1
    lora_a = jax.random.normal(ka, (rank, in_features), jnp.float32) * 0.1
    lora_b = jax.random.normal(kbm, (out_features, rank), jnp.float32) * 0.1

    params = prepare_lora_weights(w_base, b_base, lora_a, lora_b)
    out = lora_linear_forward(x, params)
    jax.block_until_ready(out)
    ref = _reference(x, w_base, b_base, lora_a, lora_b)
    assert out.shape == ref.shape, "shape mismatch (test 1)"
    assert jnp.allclose(out, ref, atol=1e-4, rtol=1e-4), "mismatch (test 1)"

    # ---- Test 2: multi-tile grid + bf16 compute path -----------------------
    b2, s2, k2, n2, r2 = 2, 32, 256, 384, 8
    kx2, kw2, kb2, ka2, kbm2 = jax.random.split(jax.random.PRNGKey(1), 5)
    x2 = jax.random.normal(kx2, (b2, s2, k2), jnp.float32)
    w2 = jax.random.normal(kw2, (n2, k2), jnp.float32) * 0.1
    bb2 = jax.random.normal(kb2, (n2,), jnp.float32) * 0.1
    la2 = jax.random.normal(ka2, (r2, k2), jnp.float32) * 0.1
    lb2 = jax.random.normal(kbm2, (n2, r2), jnp.float32) * 0.1

    params2 = prepare_lora_weights(w2, bb2, la2, lb2, tn=128, tk=128,
                                   compute_dtype=jnp.bfloat16)
    out2 = lora_linear_forward(x2, params2, tm=32)   # grid (2, 3, 2)
    jax.block_until_ready(out2)
    ref2 = _reference(x2, w2, bb2, la2, lb2)
    assert out2.shape == ref2.shape, "shape mismatch (test 2)"
    assert jnp.allclose(out2, ref2, atol=1e-1, rtol=1e-1), "mismatch (test 2)"

    print("KERNEL_OK")
</pallas_src>

<mosaic_0001>
module attributes {stable_mosaic.version = 11 : i64} {
  func.func @_xa_kernel(%arg0: i32, %arg1: i32, %arg2: memref<16x32xf32, #tpu.memory_space<vmem>>, %arg3: memref<32x4xf32, #tpu.memory_space<vmem>>, %arg4: memref<16x4xf32, #tpu.memory_space<vmem>>, %arg5: memref<16x4xf32, #tpu.memory_space<vmem>>) attributes {dimension_semantics = [#tpu.dimension_semantics<parallel>, #tpu.dimension_semantics<arbitrary>], iteration_bounds = array<i64: 1, 1>, scalar_prefetch = 0 : i64, scratch_operands = 1 : i64, tpu.core_type = #tpu.core_type<tc>, window_params = [{transform_indices = @transform_0, window_bounds = array<i64: 16, 32>}, {transform_indices = @transform_1, window_bounds = array<i64: 32, 4>}, {transform_indices = @transform_2, window_bounds = array<i64: 16, 4>}]} {
    %c0_i32 = arith.constant 0 : i32
    %0 = arith.cmpi eq, %arg1, %c0_i32 : i32
    %1 = arith.extui %0 : i1 to i32
    %c0_i32_0 = arith.constant 0 : i32
    %2 = arith.cmpi ne, %1, %c0_i32_0 : i32
    scf.if %2 {
      %cst_10 = arith.constant 0.000000e+00 : f32
      %12 = vector.broadcast %cst_10 : f32 to vector<16x4xf32>
      %c0_11 = arith.constant 0 : index
      %c0_12 = arith.constant 0 : index
      %13 = vector.load %arg5[%c0_11, %c0_12] : memref<16x4xf32, #tpu.memory_space<vmem>>, vector<16x4xf32>
      tpu.vector_store %arg5[%c0_11, %c0_12], %12 {strides = array<i32>} : memref<16x4xf32, #tpu.memory_space<vmem>>, vector<16x4xf32>,
    } else {
    }
    %c0 = arith.constant 0 : index
    %c0_1 = arith.constant 0 : index
    %3 = vector.load %arg5[%c0, %c0_1] : memref<16x4xf32, #tpu.memory_space<vmem>>, vector<16x4xf32>
    %c0_2 = arith.constant 0 : index
    %c0_3 = arith.constant 0 : index
    %4 = vector.load %arg2[%c0_2, %c0_3] : memref<16x32xf32, #tpu.memory_space<vmem>>, vector<16x32xf32>
    %c0_4 = arith.constant 0 : index
    %c0_5 = arith.constant 0 : index
    %5 = vector.load %arg3[%c0_4, %c0_5] : memref<32x4xf32, #tpu.memory_space<vmem>>, vector<32x4xf32>
    %cst = arith.constant dense<0.000000e+00> : vector<16x4xf32>
    %6 = tpu.matmul %4, %5, %cst {dimension_numbers = #tpu.dot_dimension_numbers<[1], [0], [0], [1], [0, 0, 1, 1], [], []>} : vector<16x32xf32>, vector<32x4xf32>, vector<16x4xf32> -> vector<16x4xf32>
    %7 = arith.addf %3, %6 : vector<16x4xf32>
    %c0_6 = arith.constant 0 : index
    %c0_7 = arith.constant 0 : index
    %8 = vector.load %arg5[%c0_6, %c0_7] : memref<16x4xf32, #tpu.memory_space<vmem>>, vector<16x4xf32>
    tpu.vector_store %arg5[%c0_6, %c0_7], %7 {strides = array<i32>} : memref<16x4xf32, #tpu.memory_space<vmem>>, vector<16x4xf32>,
    %c0_i32_8 = arith.constant 0 : i32
    %9 = arith.cmpi eq, %arg1, %c0_i32_8 : i32
    %10 = arith.extui %9 : i1 to i32
    %c0_i32_9 = arith.constant 0 : i32
    %11 = arith.cmpi ne, %10, %c0_i32_9 : i32
    scf.if %11 {
      %c0_10 = arith.constant 0 : index
      %c0_11 = arith.constant 0 : index
      %12 = vector.load %arg5[%c0_10, %c0_11] : memref<16x4xf32, #tpu.memory_space<vmem>>, vector<16x4xf32>
      %c0_12 = arith.constant 0 : index
      %c0_13 = arith.constant 0 : index
      %13 = vector.load %arg4[%c0_12, %c0_13] : memref<16x4xf32, #tpu.memory_space<vmem>>, vector<16x4xf32>
      tpu.vector_store %arg4[%c0_12, %c0_13], %12 {strides = array<i32>} : memref<16x4xf32, #tpu.memory_space<vmem>>, vector<16x4xf32>,
    } else {
    }
    return
  }
  func.func @transform_0(%arg0: i32, %arg1: i32) -> (i32, i32) {
    %c0_i32 = arith.constant 0 : i32
    return %arg0, %arg1 : i32, i32
  }
  func.func @transform_1(%arg0: i32, %arg1: i32) -> (i32, i32) {
    %c0_i32 = arith.constant 0 : i32
    %c0_i32_0 = arith.constant 0 : i32
    return %arg1, %c0_i32 : i32, i32
  }
  func.func @transform_2(%arg0: i32, %arg1: i32) -> (i32, i32) {
    %c0_i32 = arith.constant 0 : i32
    %c0_i32_0 = arith.constant 0 : i32
    return %arg0, %c0_i32 : i32, i32
  }
}

</mosaic_0001>

<bundles_post_ra>
// kernel: tpu_custom_call.1
= control target key start
LH: loop header
LB: loop body
LE: loop exit
PB: predicated region body
PF: predicated region fallthrough
CT: control target
= control target key end

     0   :  { %vm26_vm0 = vcmask 261120   ;;  %vm15_vm1 = vcmask 31744   ;;  %v152_v3 = vmov 0.0   ;;  %s200_s1 = inlined_call_operand.vmem [shape: f32[32,4], index: 1, kind: input, shape index: {}]   ;;  %s201_s0 = inlined_call_operand.vmem [shape: f32[16,32], index: 0, kind: input, shape index: {}]   ;;  %s202_s2 = inlined_call_operand.vmem [shape: f32[16,4], index: 2, kind: output, shape index: {}]  }
   0x1   :  { %v22_v0 = vld [vmem:[%s200_s1] sm:$0xff]  ;;  %v23_v1 = vld [vmem:[%s200_s1 + $0x8] sm:$0xff]  ;;  %v24_v2 = vld [vmem:[%s200_s1 + $0x10] sm:$0xff]  ;;  %17 = vst.msk [vmem:[#allocation2 + $0x8] sm:$0xff] %vm15_vm1, %v152_v3 }
   0x2   :  { %16 = vst.msk [vmem:[#allocation2] sm:$0xff] %vm15_vm1, %v152_v3  ;;  %v143_v4 = vpack.c.bf16 %v23_v1, %v22_v0  ;;  %v25_v5 = vld [vmem:[%s200_s1 + $0x18] sm:$0xff]  ;;  %v20_v6 = vld [vmem:[%s201_s0] sm:$0xff]  ;;  %v21_v8 = vld [vmem:[%s201_s0 + $0x8] sm:$0xff] }
   0x3   :  { %v147_v7 = vpack.c.bf16 %v25_v5, %v24_v2  ;;  %140 = vmatprep.mubr.msk.f32.mxu0 %vm26_vm0, %v20_v6 }
   0x4   :  { %144 = vmatprep.subr.bf16.mxu0 %v143_v4 }
   0x5   :  { %146 = vmatpush3.bf16.msra.mxu0 %v143_v4 }
   0x6   :  { %148 = vmatprep.subr.bf16.mxu0 %v147_v7 }
   0x8   :  { %v19_v9 = vld [vmem:[#allocation2 + $0x8] sm:$0xff] }
   0x9   :  { %150 = vmatpush3.bf16.msra.mxu0 %v147_v7  ;;  %v18_v10 = vld [vmem:[#allocation2] sm:$0xff] }
   0xc   :  { %141 = vmatmul.mubr.msk.f32.vlgmr.msra.gmra.mrb[0].mxu0 %vm26_vm0, %v21_v8 }
  0xdf   :  { %v142_v11 = vpop.f32.mrb[0].mxu0 }
  0xe0   :  { %v109_v12 = vadd.f32 %v142_v11, %v19_v9  ;;  %v99_v13 = vpop.f32.mrb[1].mxu0 }
  0xe1   :  { %v108_v14 = vadd.f32 %v99_v13, %v18_v10 }
  0xe2   :  { %112 = vst.msk [vmem:[#allocation2 + $0x8] sm:$0xff] %vm15_vm1, %v109_v12 }
  0xe3   :  { %111 = vst.msk [vmem:[#allocation2] sm:$0xff] %vm15_vm1, %v108_v14 }
  0xe9   :  { %v117_v15 = vld [vmem:[#allocation2 + $0x8] sm:$0xff] }
  0xea   :  { %119 = vst.msk [vmem:[%s202_s2 + $0x8] sm:$0xff] %vm15_vm1, %v117_v15  ;;  %v116_v16 = vld [vmem:[#allocation2] sm:$0xff] }
  0xeb   :  { %118 = vst.msk [vmem:[%s202_s2] sm:$0xff] %vm15_vm1, %v116_v16 }

</bundles_post_ra>
